<compile_context>
chip_gen: v7x
topology: tpu7x:2x2x1
jax: 0.10.0
libtpu: 0.0.40
codegen_flags: <defaults>
</compile_context>

<pallas_src>
import jax
import jax.numpy as jnp
from jax.experimental import pallas as pl
from jax.experimental.pallas import tpu as pltpu


def _round_up(x, m):
    return ((x + m - 1) // m) * m


def _make_pred_kernel(five_a):
    """five_a = 5 * num_anchors (Python int, closed over as a constant)."""

    def kernel(x_ref, w1_ref, b1_ref, w2_ref, b2_ref, out_ref):
        # First 1x1 conv == matmul over channels (MXU, f32 accumulation).
        h = jnp.dot(x_ref[...], w1_ref[...],
                    preferred_element_type=jnp.float32) + b1_ref[...]
        # TODO(synk): nn.Dropout(p=0.3) is identity at inference; training-mode
        # random masking is not implemented here.
        # LeakyReLU (PyTorch default negative_slope = 0.01), kept in f32 (VPU).
        h = jnp.where(h > 0, h, 0.01 * h)
        # Second 1x1 conv. Cast activations to the weight dtype so an optional
        # bf16 MXU path (enabled from the wrapper) works; accumulate in f32.
        z = jnp.dot(h.astype(w2_ref.dtype), w2_ref[...],
                    preferred_element_type=jnp.float32) + b2_ref[...]
        # Per-channel post-processing masks generated in-kernel (no extra DMA):
        #   conf channel of each anchor (comp==0)      -> sigmoid(z)
        #   tx, ty channels (comp==1,2)                -> sigmoid(z) - 0.5
        #   tw, th, class scores and lane padding      -> raw z
        ch = jax.lax.broadcasted_iota(jnp.int32, z.shape, 1).astype(jnp.float32)
        comp = ch - 5.0 * jnp.floor(ch * 0.2)          # ch % 5 (float, no int div)
        is_anchor = ch < float(five_a)
        m_sig = is_anchor & (comp < 0.5)
        m_shift = is_anchor & (comp > 0.5) & (comp < 2.5)
        # Sigmoid via EUP exp + EUP approx reciprocal (frees VALU/vst bandwidth).
        sig = pl.reciprocal(1.0 + jnp.exp(-z), approx=True)
        out_ref[...] = jnp.where(m_sig, sig, jnp.where(m_shift, sig - 0.5, z))

    return kernel


def _extract_anchor_data(anchor_data, anchor_idx):
    # anchor_data: (B, A, D, H, W) -> (M, D) gathered by flat anchor index.
    B, A, D, H, W = anchor_data.shape
    flat = jnp.transpose(anchor_data, (0, 1, 3, 4, 2)).reshape(-1, D)
    return flat[anchor_idx]


def _extract_class_scores(all_scores, anchor_idx, num_anchors):
    # all_scores: (B, C, H, W) -> (M, C) gathered by flat anchor index.
    B, C, H, W = all_scores.shape
    A = num_anchors
    s = jnp.transpose(all_scores, (0, 2, 3, 1)).reshape(B, 1, H, W, C)
    s = jnp.broadcast_to(s, (B, A, H, W, C)).reshape(B * A * H * W, C)
    return s[anchor_idx]


def prediction_network_forward(features, params, num_anchors, num_classes,
                               pos_anchor_idx=None, neg_anchor_idx=None,
                               use_bf16_matmul=False):
    """features: (B, in_dim, H, W) float32, NCHW (PyTorch convention).

    use_bf16_matmul: feed the MXU bf16 inputs (f32 accumulation and f32
    elementwise epilogue). Recommended on v6e/v7x; default False to keep exact
    f32 semantics.
    """
    w1, b1, w2, b2 = params          # w1: (Cin, hid), w2: (hid, 5A+C)
    B, Cin, H, W = features.shape
    A, C = num_anchors, num_classes
    Cout = 5 * A + C
    hid = w1.shape[1]
    M = B * H * W

    LANE = 128
    Cout_p = _round_up(Cout, LANE)      # lane-dense output channels
    hid_p = _round_up(hid, LANE)        # lane-dense hidden channels

    # Row tile: up to 512 rows per grid step (good DMA/compute overlap, VMEM
    # footprint independent of batch size and safely under the scoped-VMEM
    # default on v5e/v6e/v7x for realistic Cin). Pad M to a multiple of TM so
    # no garbage rows can leak into the wrapper's reshape.
    TM = min(512, _round_up(M, 16))
    M_p = _round_up(M, TM)

    # NCHW -> (M, Cin) channels-last flattened, padded to M_p rows.
    x = jnp.transpose(features, (0, 2, 3, 1)).reshape(M, Cin).astype(jnp.float32)
    x_p = jnp.pad(x, ((0, M_p - M), (0, 0)))

    # Zero-pad weights/biases to the lane-dense channel sizes. Padded hidden
    # columns produce h=0 -> leaky(0)=0 -> multiply zero w2 rows, so results
    # are unchanged; padded output lanes are sliced off below.
    w1_p = jnp.pad(w1.astype(jnp.float32), ((0, 0), (0, hid_p - hid)))
    b1_p = jnp.pad(b1.astype(jnp.float32), (0, hid_p - hid)).reshape(1, hid_p)
    w2_p = jnp.pad(w2.astype(jnp.float32),
                   ((0, hid_p - hid), (0, Cout_p - Cout)))
    b2_p = jnp.pad(b2.astype(jnp.float32), (0, Cout_p - Cout)).reshape(1, Cout_p)

    mm_dtype = jnp.bfloat16 if use_bf16_matmul else jnp.float32
    x_p = x_p.astype(mm_dtype)
    w1_p = w1_p.astype(mm_dtype)
    w2_p = w2_p.astype(mm_dtype)

    itemsize = jnp.dtype(mm_dtype).itemsize
    cost = pl.CostEstimate(
        flops=2 * M_p * (Cin * hid_p + hid_p * Cout_p),
        transcendentals=M_p * Cout_p,
        bytes_accessed=(M_p * Cin * itemsize          # x
                        + Cin * hid_p * itemsize       # w1
                        + hid_p * Cout_p * itemsize    # w2
                        + 4 * (hid_p + Cout_p)         # biases (f32)
                        + 4 * M_p * Cout_p),           # output (f32)
    )

    pred_p = pl.pallas_call(
        _make_pred_kernel(5 * A),
        out_shape=jax.ShapeDtypeStruct((M_p, Cout_p), jnp.float32),
        grid=(M_p // TM,),
        in_specs=[
            pl.BlockSpec((TM, Cin), lambda i: (i, 0)),        # x: tiled over rows
            pl.BlockSpec((Cin, hid_p), lambda i: (0, 0)),     # w1: resident
            pl.BlockSpec((1, hid_p), lambda i: (0, 0)),       # b1: resident
            pl.BlockSpec((hid_p, Cout_p), lambda i: (0, 0)),  # w2: resident
            pl.BlockSpec((1, Cout_p), lambda i: (0, 0)),      # b2: resident
        ],
        out_specs=pl.BlockSpec((TM, Cout_p), lambda i: (i, 0)),
        compiler_params=pltpu.CompilerParams(
            dimension_semantics=("parallel",)),
        cost_estimate=cost,
    )(x_p, w1_p, b1_p, w2_p, b2_p)

    # Drop row/lane padding, back to NCHW, split exactly like the PyTorch module.
    pred = pred_p[:M, :Cout]
    pred_nchw = jnp.transpose(pred.reshape(B, H, W, Cout), (0, 3, 1, 2))
    anchor_datas = pred_nchw[:, :5 * A, :, :].reshape(B, A, 5, H, W)
    conf_scores = anchor_datas[:, :, 0:1]          # already sigmoided in-kernel
    offsets = anchor_datas[:, :, 1:]               # tx,ty already sigmoid-0.5 in-kernel
    class_scores = pred_nchw[:, 5 * A:, :, :]

    if pos_anchor_idx is not None:
        conf_pos = _extract_anchor_data(conf_scores, pos_anchor_idx)
        conf_neg = _extract_anchor_data(conf_scores, neg_anchor_idx)
        conf_scores = jnp.concatenate([conf_pos, conf_neg], axis=0)  # (2M, 1)
        offsets = _extract_anchor_data(offsets, pos_anchor_idx)      # (M, 4)
        class_scores = _extract_class_scores(class_scores, pos_anchor_idx, A)  # (M, C)
    else:
        conf_scores = conf_scores.squeeze(2)                         # (B, A, H, W)
    return conf_scores, offsets, class_scores


def init_params(key, in_dim, hidden_dim, num_anchors, num_classes):
    Cout = 5 * num_anchors + num_classes
    k1, k2, k3, k4 = jax.random.split(key, 4)
    # Conv2d(in_dim, hidden_dim, 1) weight (hidden, in_dim, 1, 1) stored
    # transposed as (in_dim, hidden) so the kernel can matmul directly.
    w1 = jax.random.normal(k1, (in_dim, hidden_dim), jnp.float32) * 0.1
    b1 = jax.random.normal(k2, (hidden_dim,), jnp.float32) * 0.1
    w2 = jax.random.normal(k3, (hidden_dim, Cout), jnp.float32) * 0.1
    b2 = jax.random.normal(k4, (Cout,), jnp.float32) * 0.1
    return (w1, b1, w2, b2)


if __name__ == "__main__":
    # Small deterministic config: B=2, in_dim=4, H=W=7 (as the module expects),
    # hidden=32, num_anchors=3, num_classes=4 -> Cout = 5*3+4 = 19.
    B, in_dim, H, W = 2, 4, 7, 7
    hidden_dim, num_anchors, num_classes = 32, 3, 4

    key = jax.random.PRNGKey(0)
    k_feat, k_params = jax.random.split(key)
    features = jax.random.normal(k_feat, (B, in_dim, H, W), jnp.float32)
    params = init_params(k_params, in_dim, hidden_dim, num_anchors, num_classes)

    # Inference mode.
    conf, offs, cls = prediction_network_forward(
        features, params, num_anchors, num_classes)
    jax.block_until_ready((conf, offs, cls))
    assert conf.shape == (B, num_anchors, H, W)
    assert offs.shape == (B, num_anchors, 4, H, W)
    assert cls.shape == (B, num_classes, H, W)

    # Training mode (anchor extraction handled as JAX glue gathers).
    Mpos = 5
    total_anchors = B * num_anchors * H * W
    pos_idx = jnp.array([0, 7, 50, 123, total_anchors - 1], dtype=jnp.int32)
    neg_idx = jnp.array([3, 11, 60, 200, 250], dtype=jnp.int32)
    conf_t, offs_t, cls_t = prediction_network_forward(
        features, params, num_anchors, num_classes,
        pos_anchor_idx=pos_idx, neg_anchor_idx=neg_idx)
    jax.block_until_ready((conf_t, offs_t, cls_t))
    assert conf_t.shape == (2 * Mpos, 1)
    assert offs_t.shape == (Mpos, 4)
    assert cls_t.shape == (Mpos, num_classes)

    print("KERNEL_OK")
</pallas_src>

<mosaic_0001>
module attributes {stable_mosaic.version = 11 : i64} {
  func.func @kernel(%arg0: i32, %arg1: memref<112x4xf32, #tpu.memory_space<vmem>>, %arg2: memref<4x128xf32, #tpu.memory_space<vmem>>, %arg3: memref<1x128xf32, #tpu.memory_space<vmem>>, %arg4: memref<128x128xf32, #tpu.memory_space<vmem>>, %arg5: memref<1x128xf32, #tpu.memory_space<vmem>>, %arg6: memref<112x128xf32, #tpu.memory_space<vmem>>) attributes {dimension_semantics = [#tpu.dimension_semantics<parallel>], iteration_bounds = array<i64: 1>, scalar_prefetch = 0 : i64, scratch_operands = 0 : i64, tpu.core_type = #tpu.core_type<tc>, window_params = [{transform_indices = @transform_0, window_bounds = array<i64: 112, 4>}, {pipeline_mode = #tpu.pipeline_mode<synchronous>, transform_indices = @transform_1, window_bounds = array<i64: 4, 128>}, {pipeline_mode = #tpu.pipeline_mode<synchronous>, transform_indices = @transform_2, window_bounds = array<i64: 1, 128>}, {pipeline_mode = #tpu.pipeline_mode<synchronous>, transform_indices = @transform_3, window_bounds = array<i64: 128, 128>}, {pipeline_mode = #tpu.pipeline_mode<synchronous>, transform_indices = @transform_4, window_bounds = array<i64: 1, 128>}, {transform_indices = @transform_5, window_bounds = array<i64: 112, 128>}]} {
    %c0 = arith.constant 0 : index
    %c0_0 = arith.constant 0 : index
    %0 = vector.load %arg1[%c0, %c0_0] : memref<112x4xf32, #tpu.memory_space<vmem>>, vector<112x4xf32>
    %c0_1 = arith.constant 0 : index
    %c0_2 = arith.constant 0 : index
    %1 = vector.load %arg2[%c0_1, %c0_2] : memref<4x128xf32, #tpu.memory_space<vmem>>, vector<4x128xf32>
    %cst = arith.constant dense<0.000000e+00> : vector<112x128xf32>
    %2 = tpu.matmul %0, %1, %cst {dimension_numbers = #tpu.dot_dimension_numbers<[1], [0], [0], [1], [0, 0, 1, 1], [], []>} : vector<112x4xf32>, vector<4x128xf32>, vector<112x128xf32> -> vector<112x128xf32>
    %c0_3 = arith.constant 0 : index
    %c0_4 = arith.constant 0 : index
    %3 = vector.load %arg3[%c0_3, %c0_4] : memref<1x128xf32, #tpu.memory_space<vmem>>, vector<1x128xf32>
    %4 = vector.broadcast %3 : vector<1x128xf32> to vector<112x128xf32>
    %5 = arith.addf %2, %4 : vector<112x128xf32>
    %cst_5 = arith.constant 0.000000e+00 : f32
    %6 = vector.broadcast %cst_5 : f32 to vector<112x128xf32>
    %7 = arith.cmpf ogt, %5, %6 : vector<112x128xf32>
    %cst_6 = arith.constant 0.00999999977 : f32
    %8 = vector.broadcast %cst_6 : f32 to vector<112x128xf32>
    %9 = arith.mulf %8, %5 : vector<112x128xf32>
    %10 = arith.select %7, %5, %9 : vector<112x128xi1>, vector<112x128xf32>
    %c0_7 = arith.constant 0 : index
    %c0_8 = arith.constant 0 : index
    %11 = vector.load %arg4[%c0_7, %c0_8] : memref<128x128xf32, #tpu.memory_space<vmem>>, vector<128x128xf32>
    %cst_9 = arith.constant dense<0.000000e+00> : vector<112x128xf32>
    %12 = tpu.matmul %10, %11, %cst_9 {dimension_numbers = #tpu.dot_dimension_numbers<[1], [0], [0], [1], [0, 0, 1, 1], [], []>} : vector<112x128xf32>, vector<128x128xf32>, vector<112x128xf32> -> vector<112x128xf32>
    %c0_10 = arith.constant 0 : index
    %c0_11 = arith.constant 0 : index
    %13 = vector.load %arg5[%c0_10, %c0_11] : memref<1x128xf32, #tpu.memory_space<vmem>>, vector<1x128xf32>
    %14 = vector.broadcast %13 : vector<1x128xf32> to vector<112x128xf32>
    %15 = arith.addf %12, %14 : vector<112x128xf32>
    %16 = tpu.iota {dimensions = array<i32: 1>} : vector<112x128xi32>
    %17 = arith.sitofp %16 : vector<112x128xi32> to vector<112x128xf32>
    %cst_12 = arith.constant 2.000000e-01 : f32
    %18 = vector.broadcast %cst_12 : f32 to vector<112x128xf32>
    %19 = arith.mulf %17, %18 : vector<112x128xf32>
    %20 = math.floor %19 : vector<112x128xf32>
    %cst_13 = arith.constant 5.000000e+00 : f32
    %21 = vector.broadcast %cst_13 : f32 to vector<112x128xf32>
    %22 = arith.mulf %21, %20 : vector<112x128xf32>
    %23 = arith.subf %17, %22 : vector<112x128xf32>
    %cst_14 = arith.constant 1.500000e+01 : f32
    %24 = vector.broadcast %cst_14 : f32 to vector<112x128xf32>
    %25 = arith.cmpf olt, %17, %24 : vector<112x128xf32>
    %cst_15 = arith.constant 5.000000e-01 : f32
    %26 = vector.broadcast %cst_15 : f32 to vector<112x128xf32>
    %27 = arith.cmpf olt, %23, %26 : vector<112x128xf32>
    %28 = arith.andi %25, %27 : vector<112x128xi1>
    %cst_16 = arith.constant 5.000000e-01 : f32
    %29 = vector.broadcast %cst_16 : f32 to vector<112x128xf32>
    %30 = arith.cmpf ogt, %23, %29 : vector<112x128xf32>
    %31 = arith.andi %25, %30 : vector<112x128xi1>
    %cst_17 = arith.constant 2.500000e+00 : f32
    %32 = vector.broadcast %cst_17 : f32 to vector<112x128xf32>
    %33 = arith.cmpf olt, %23, %32 : vector<112x128xf32>
    %34 = arith.andi %31, %33 : vector<112x128xi1>
    %cst_18 = arith.constant 0.000000e+00 : f32
    %35 = vector.broadcast %cst_18 : f32 to vector<112x128xf32>
    %36 = arith.subf %35, %15 : vector<112x128xf32>
    %37 = math.exp %36 : vector<112x128xf32>
    %cst_19 = arith.constant 1.000000e+00 : f32
    %38 = vector.broadcast %cst_19 : f32 to vector<112x128xf32>
    %39 = arith.addf %38, %37 : vector<112x128xf32>
    %40 = tpu.reciprocal %39 {approx = true} : vector<112x128xf32> -> vector<112x128xf32>
    %cst_20 = arith.constant 5.000000e-01 : f32
    %41 = vector.broadcast %cst_20 : f32 to vector<112x128xf32>
    %42 = arith.subf %40, %41 : vector<112x128xf32>
    %43 = arith.select %34, %42, %15 : vector<112x128xi1>, vector<112x128xf32>
    %44 = arith.select %28, %40, %43 : vector<112x128xi1>, vector<112x128xf32>
    %c0_21 = arith.constant 0 : index
    %c0_22 = arith.constant 0 : index
    %45 = vector.load %arg6[%c0_21, %c0_22] : memref<112x128xf32, #tpu.memory_space<vmem>>, vector<112x128xf32>
    tpu.vector_store %arg6[%c0_21, %c0_22], %44 {strides = array<i32>} : memref<112x128xf32, #tpu.memory_space<vmem>>, vector<112x128xf32>,
    return
  }
  func.func @transform_0(%arg0: i32) -> (i32, i32) {
    %c0_i32 = arith.constant 0 : i32
    %c0_i32_0 = arith.constant 0 : i32
    return %arg0, %c0_i32 : i32, i32
  }
  func.func @transform_1(%arg0: i32) -> (i32, i32) {
    %c0_i32 = arith.constant 0 : i32
    %c0_i32_0 = arith.constant 0 : i32
    %c0_i32_1 = arith.constant 0 : i32
    return %c0_i32, %c0_i32_0 : i32, i32
  }
  func.func @transform_2(%arg0: i32) -> (i32, i32) {
    %c0_i32 = arith.constant 0 : i32
    %c0_i32_0 = arith.constant 0 : i32
    %c0_i32_1 = arith.constant 0 : i32
    return %c0_i32, %c0_i32_0 : i32, i32
  }
  func.func @transform_3(%arg0: i32) -> (i32, i32) {
    %c0_i32 = arith.constant 0 : i32
    %c0_i32_0 = arith.constant 0 : i32
    %c0_i32_1 = arith.constant 0 : i32
    return %c0_i32, %c0_i32_0 : i32, i32
  }
  func.func @transform_4(%arg0: i32) -> (i32, i32) {
    %c0_i32 = arith.constant 0 : i32
    %c0_i32_0 = arith.constant 0 : i32
    %c0_i32_1 = arith.constant 0 : i32
    return %c0_i32, %c0_i32_0 : i32, i32
  }
  func.func @transform_5(%arg0: i32) -> (i32, i32) {
    %c0_i32 = arith.constant 0 : i32
    %c0_i32_0 = arith.constant 0 : i32
    return %arg0, %c0_i32 : i32, i32
  }
}

</mosaic_0001>

<bundles_post_ra>
// kernel: tpu_custom_call.1
= control target key start
LH: loop header
LB: loop body
LE: loop exit
PB: predicated region body
PF: predicated region fallthrough
CT: control target
= control target key end

     0   :  { %10 = vsyncpa [#allocation3], 0  ;;  %s1194_s0 = inlined_call_operand.vmem [shape: f32[112,4], index: 0, kind: input, shape index: {}]   ;;  %s1195_s1 = inlined_call_operand.vmem [shape: f32[4,128], index: 1, kind: input, shape index: {}]   ;;  %s1196_s2 = inlined_call_operand.vmem [shape: f32[1,128], index: 2, kind: input, shape index: {}]   ;;  %s1197_s3 = inlined_call_operand.hbm [shape: f32[128,128], index: 3, kind: input, shape index: {}]   ;;  %s1198_s4 = inlined_call_operand.vmem [shape: f32[1,128], index: 4, kind: input, shape index: {}]   ;;  %s1199_s5 = inlined_call_operand.hbm [shape: f32[112,128], index: 5, kind: output, shape index: {}]  }
   0x1   :  { %11 = vsyncpa [#allocation4], 0  ;;  %s904_s18 = smov [#allocation2]   ;;  %s856_s22 = scalar_lea.hbm %s1197_s3, 2048 }
   0x2   :  { %s23_s19 = sshll.u32 %s904_s18, 4  ;;  %p857_p0 = scmp.ne.s32.totalorder %s1197_s3, %s856_s22  ;;  %s24_s19 = int_to_ptr.vmem [resolvable:$true] %s23_s19 }
   0x3   :  { %p860_p1 = scmp.lt.u32.totalorder %s856_s22, %s1197_s3 }
   0x5   :  { %p862_p2 = pnand %p860_p1, %p857_p0 }
   0x7   :  { %865 = shalt.err (!%p862_p2)
}
   0x8   :  { %s866_s27 = scalar_lea.vmem %s24_s19, 2048  ;;  %p871_p4 = scmp.lt.s32.totalorder %s24_s19, %s24_s19 }
   0x9   :  { %p867_p3 = scmp.ne.s32.totalorder %s24_s19, %s866_s27  ;;  %p872_p5 = scmp.lt.s32.totalorder %s866_s27, %s866_s27 }
   0xb   :  { %p873_p6 = por %p872_p5, %p871_p4 }
   0xd   :  { %p874_p7 = pnand %p873_p6, %p867_p3 }
   0xf   :  { %877 = shalt.err (!%p874_p7)
}
  0x10   :  { %s905_s28 = smov 128   ;;  %s906_s29 = smov 8  }
  0x11   :  { %29 = dma.hbm_to_vmem [thread:$0]  %s1197_s3, 2048, %s24_s19, [#allocation3], %s905_s28, %s905_s28, %s906_s29  }
  0x12   :  { %900 = dma.done.wait [#allocation3], 2048  }
  0x13   :  { %901 = vsyncadd [#allocation3], 4294965248  ;;  %vm100_vm0 = vcmask 1043456   ;;  %vm57_vm1 = vcmask 31744   ;;  %v49_v0 = vld [vmem:[%s1195_s1] sm:$0xf] }
  0x14   :  { %v35_v1 = vld [vmem:[%s1194_s0] sm:$0xff]  ;;  %v36_v2 = vld [vmem:[%s1194_s0 + $0x8] sm:$0xff]  ;;  %672 = vmatprep.subr.msk.mxu0 %vm100_vm0, %v49_v0  ;;  %v37_v3 = vld [vmem:[%s1194_s0 + $0x10] sm:$0xff] }
  0x15   :  { %674 = vmatprep.mubr.msk.f32.mxu0 %vm57_vm1, %v35_v1  ;;  %673 = vmatpush3.msk.msra.mxu0 %vm100_vm0, %v49_v0  ;;  %v38_v4 = vld [vmem:[%s1194_s0 + $0x18] sm:$0xff]  ;;  %v39_v5 = vld [vmem:[%s1194_s0 + $0x20] sm:$0xff]  ;;  %v282_v7 = vld [vmem:[#allocation2 + $0x8] sm:$0xff] }
  0x16   :  { %675 = vmatmul.mubr.msk.f32.vlgmr.msra.gmra.mrb[0].mxu0 %vm57_vm1, %v36_v2  ;;  %v281_v6 = vld [vmem:[#allocation2] sm:$0xff]  ;;  %v283_v8 = vld [vmem:[#allocation2 + $0x10] sm:$0xff]  ;;  %v284_v10 = vld [vmem:[#allocation2 + $0x18] sm:$0xff] }
  0x17   :  { %677 = vmatprep.mubr.msk.f32.mxu0 %vm57_vm1, %v37_v3  ;;  %v748_v9 = vpack.c.bf16 %v282_v7, %v281_v6  ;;  %v752_v11 = vpack.c.bf16 %v284_v10, %v283_v8  ;;  %v285_v12 = vld [vmem:[#allocation2 + $0x20] sm:$0xff]  ;;  %v286_v13 = vld [vmem:[#allocation2 + $0x28] sm:$0xff]  ;;  %v41_v15 = vld [vmem:[%s1194_s0 + $0x30] sm:$0xff] }
  0x18   :  { %v40_v14 = vld [vmem:[%s1194_s0 + $0x28] sm:$0xff]  ;;  %v756_v16 = vpack.c.bf16 %v286_v13, %v285_v12  ;;  %v287_v17 = vld [vmem:[#allocation2 + $0x30] sm:$0xff]  ;;  %v288_v18 = vld [vmem:[#allocation2 + $0x38] sm:$0xff] }
  0x19   :  { %749 = vmatprep.subr.bf16.mxu0 %v748_v9  ;;  %780 = vmatprep.subr.bf16.mxu1 %v748_v9  ;;  %v42_v19 = vld [vmem:[%s1194_s0 + $0x38] sm:$0xff]  ;;  %v43_v20 = vld [vmem:[%s1194_s0 + $0x40] sm:$0xff]  ;;  %v760_v21 = vpack.c.bf16 %v288_v18, %v287_v17  ;;  %v290_v23 = vld [vmem:[#allocation2 + $0x48] sm:$0xff] }
  0x1a   :  { %678 = vmatmul.mubr.msk.f32.gmra.mrb[2].mxu0 %vm57_vm1, %v38_v4  ;;  %788 = vmatpush3.bf16.msra.mxu1 %v748_v9  ;;  %v289_v22 = vld [vmem:[#allocation2 + $0x40] sm:$0xff]  ;;  %v44_v24 = vld [vmem:[%s1194_s0 + $0x48] sm:$0xff]  ;;  %v45_v25 = vld [vmem:[%s1194_s0 + $0x50] sm:$0xff] }
  0x1b   :  { %680 = vmatprep.mubr.msk.f32.mxu0 %vm57_vm1, %v39_v5  ;;  %751 = vmatpush3.bf16.msra.mxu0 %v748_v9  ;;  %v764_v26 = vpack.c.bf16 %v290_v23, %v289_v22  ;;  %v291_v27 = vld [vmem:[#allocation2 + $0x50] sm:$0xff]  ;;  %v292_v28 = vld [vmem:[#allocation2 + $0x58] sm:$0xff]  ;;  %v47_v30 = vld [vmem:[%s1194_s0 + $0x60] sm:$0xff] }
  0x1c   :  { %753 = vmatprep.subr.bf16.mxu0 %v752_v11  ;;  %781 = vmatprep.subr.bf16.mxu1 %v752_v11  ;;  %v46_v29 = vld [vmem:[%s1194_s0 + $0x58] sm:$0xff]  ;;  %v768_v31 = vpack.c.bf16 %v292_v28, %v291_v27  ;;  %v48_v32 = vld [vmem:[%s1194_s0 + $0x68] sm:$0xff]  ;;  %v293_v33 = vld [vmem:[#allocation2 + $0x60] sm:$0xff] }
  0x1d   :  { %v294_v34 = vld [vmem:[#allocation2 + $0x68] sm:$0xff]  ;;  %v295_v36 = vld [vmem:[#allocation2 + $0x70] sm:$0xff]  ;;  %v296_v37 = vld [vmem:[#allocation2 + $0x78] sm:$0xff] }
  0x1e   :  { %681 = vmatmul.mubr.msk.f32.gmra.mrb[4].mxu0 %vm57_vm1, %v40_v14  ;;  %789 = vmatpush3.bf16.msra.mxu1 %v752_v11  ;;  %v772_v35 = vpack.c.bf16 %v294_v34, %v293_v33  ;;  %v776_v38 = vpack.c.bf16 %v296_v37, %v295_v36  ;;  %v1015_v39 = vld [vmem:[%s1196_s2] ss:$0 sm:$0xff] }
  0x1f   :  { %683 = vmatprep.mubr.msk.f32.mxu0 %vm57_vm1, %v41_v15  ;;  %755 = vmatpush3.bf16.msra.mxu0 %v752_v11  ;;  %v1034_v33 = vld [vmem:[%s1198_s4] ss:$0 sm:$0xff]  ;;  %s907_s4 = smov [#allocation5]  }
  0x20   :  { %757 = vmatprep.subr.bf16.mxu0 %v756_v16  ;;  %782 = vmatprep.subr.bf16.mxu1 %v756_v16  ;;  %s584_s13 = sshll.u32 %s907_s4, 4  ;;  %s585_s13 = int_to_ptr.vmem [resolvable:$true] %s584_s13 }
  0x21   :  { %s878_s1 = scalar_lea.vmem %s585_s13, 1792  ;;  %p883_p9 = scmp.lt.s32.totalorder %s585_s13, %s585_s13 }
  0x22   :  { %684 = vmatmul.mubr.msk.f32.gmra.mrb[6].mxu0 %vm57_vm1, %v42_v19  ;;  %790 = vmatpush3.bf16.msra.mxu1 %v756_v16  ;;  %p879_p8 = scmp.ne.s32.totalorder %s585_s13, %s878_s1  ;;  %p884_p10 = scmp.lt.s32.totalorder %s878_s1, %s878_s1 }
  0x23   :  { %686 = vmatprep.mubr.msk.f32.mxu0 %vm57_vm1, %v43_v20  ;;  %759 = vmatpush3.bf16.msra.mxu0 %v756_v16 }
  0x24   :  { %761 = vmatprep.subr.bf16.mxu0 %v760_v21  ;;  %783 = vmatprep.subr.bf16.mxu1 %v760_v21  ;;  %p885_p11 = por %p884_p10, %p883_p9 }
  0x26   :  { %687 = vmatmul.mubr.msk.f32.gmra.mrb[8].mxu0 %vm57_vm1, %v44_v24  ;;  %791 = vmatpush3.bf16.msra.mxu1 %v760_v21  ;;  %p886_p12 = pnand %p885_p11, %p879_p8 }
  0x27   :  { %689 = vmatprep.mubr.msk.f32.mxu0 %vm57_vm1, %v45_v25  ;;  %763 = vmatpush3.bf16.msra.mxu0 %v760_v21 }
  0x28   :  { %765 = vmatprep.subr.bf16.mxu0 %v764_v26  ;;  %784 = vmatprep.subr.bf16.mxu1 %v764_v26 }
  0x2a   :  { %690 = vmatmul.mubr.msk.f32.gmra.mrb[10].mxu0 %vm57_vm1, %v46_v29  ;;  %792 = vmatpush3.bf16.msra.mxu1 %v764_v26 }
  0x2b   :  { %692 = vmatprep.mubr.msk.f32.mxu0 %vm57_vm1, %v47_v30  ;;  %767 = vmatpush3.bf16.msra.mxu0 %v764_v26 }
  0x2c   :  { %769 = vmatprep.subr.bf16.mxu0 %v768_v31  ;;  %785 = vmatprep.subr.bf16.mxu1 %v768_v31 }
  0x2e   :  { %693 = vmatmul.mubr.msk.f32.gmra.mrb[12].mxu0 %vm57_vm1, %v48_v32  ;;  %793 = vmatpush3.bf16.msra.mxu1 %v768_v31  ;;  %v439_v32 = vlaneseq }
  0x2f   :  { %771 = vmatpush3.bf16.msra.mxu0 %v768_v31  ;;  %786 = vmatprep.subr.bf16.mxu1 %v772_v35 }
  0x30   :  { %773 = vmatprep.subr.bf16.mxu0 %v772_v35 }
  0x32   :  { %794 = vmatpush3.bf16.msra.mxu1 %v772_v35 }
  0x33   :  { %775 = vmatpush3.bf16.msra.mxu0 %v772_v35  ;;  %787 = vmatprep.subr.bf16.mxu1 %v776_v38  ;;  %v440_v35 = vand.u32 127, %v439_v32 }
  0x34   :  { %777 = vmatprep.subr.bf16.mxu0 %v776_v38 }
  0x36   :  { %795 = vmatpush3.bf16.msra.mxu1 %v776_v38 }
  0x37   :  { %779 = vmatpush3.bf16.msra.mxu0 %v776_v38 }
  0xe9   :  { %v676_v40 = vpop.f32.mrb[0].mxu0 }
  0xea   :  { %v176_v41 = vadd.f32 %v676_v40, %v1015_v39  ;;  %v170_v42 = vpop.f32.mrb[1].mxu0  ;;  %v1043_v40 = vcvt.s32.f32 %v440_v35 }
  0xeb   :  { %v171_v43 = vadd.f32 %v1015_v39, %v170_v42 }
  0xec   :  { %v254_v44 = vmul.f32 0.01, %v176_v41  ;;  %vm240_vm2 = vcmp.gt.f32.partialorder %v176_v41, 0.0  ;;  %vm446_vm0 = vcmp.lt.f32.partialorder %v1043_v40, 15.0 }
  0xed   :  { %v253_v45 = vmul.f32 0.01, %v171_v43  ;;  %v679_v46 = vpop.f32.mrb[2].mxu0  ;;  %vm239_vm3 = vcmp.gt.f32.partialorder %v171_v43, 0.0 }
  0xee   :  { %v186_v47 = vadd.f32 %v679_v46, %v1015_v39  ;;  %v180_v48 = vpop.f32.mrb[3].mxu0  ;;  %v268_v51 = vsel %vm240_vm2, %v176_v41, %v254_v44 }
  0xef   :  { %v181_v49 = vadd.f32 %v1015_v39, %v180_v48  ;;  %v267_v50 = vsel %vm239_vm3, %v171_v43, %v253_v45 }
  0xf0   :  { %v256_v52 = vmul.f32 0.01, %v186_v47  ;;  %727 = vmatprep.mubr.f32.mxu0 %v267_v50  ;;  %vm242_vm5 = vcmp.gt.f32.partialorder %v186_v47, 0.0 }
  0xf1   :  { %v255_v53 = vmul.f32 0.01, %v181_v49  ;;  %v682_v54 = vpop.f32.mrb[4].mxu0  ;;  %728 = vmatmul.mubr.f32.vlgmr.msra.gmra.mrb[14].mxu0 %v268_v51  ;;  %vm241_vm4 = vcmp.gt.f32.partialorder %v181_v49, 0.0 }
  0xf2   :  { %v196_v55 = vadd.f32 %v682_v54, %v1015_v39  ;;  %v190_v56 = vpop.f32.mrb[5].mxu0  ;;  %v270_v60 = vsel %vm242_vm5, %v186_v47, %v256_v52 }
  0xf3   :  { %v191_v57 = vadd.f32 %v1015_v39, %v190_v56  ;;  %v269_v58 = vsel %vm241_vm4, %v181_v49, %v255_v53  ;;  %v442_v49 = vmul.f32 0.2, %v1043_v40 }
  0xf4   :  { %v258_v59 = vmul.f32 0.01, %v196_v55  ;;  %730 = vmatprep.mubr.f32.mxu0 %v269_v58  ;;  %vm244_vm7 = vcmp.gt.f32.partialorder %v196_v55, 0.0 }
  0xf5   :  { %v257_v61 = vmul.f32 0.01, %v191_v57  ;;  %v685_v62 = vpop.f32.mrb[6].mxu0  ;;  %731 = vmatmul.mubr.f32.gmra.mrb[16].mxu0 %v270_v60  ;;  %vm243_vm6 = vcmp.gt.f32.partialorder %v191_v57, 0.0  ;;  %v443_v58 = vfloor.f32 %v442_v49 }
  0xf6   :  { %v206_v63 = vadd.f32 %v685_v62, %v1015_v39  ;;  %v200_v0 = vpop.f32.mrb[7].mxu0  ;;  %v272_v4 = vsel %vm244_vm7, %v196_v55, %v258_v59 }
  0xf7   :  { %v201_v1 = vadd.f32 %v1015_v39, %v200_v0  ;;  %v271_v2 = vsel %vm243_vm6, %v191_v57, %v257_v61 }
  0xf8   :  { %v260_v3 = vmul.f32 0.01, %v206_v63  ;;  %733 = vmatprep.mubr.f32.mxu0 %v271_v2  ;;  %vm246_vm9 = vcmp.gt.f32.partialorder %v206_v63, 0.0 }
  0xf9   :  { %v688_v5 = vpop.f32.mrb[8].mxu0  ;;  %734 = vmatmul.mubr.f32.gmra.mrb[18].mxu0 %v272_v4  ;;  %vm245_vm8 = vcmp.gt.f32.partialorder %v201_v1, 0.0  ;;  %v259_v6 = vmul.f32 0.01, %v201_v1 }
  0xfa   :  { %v216_v7 = vadd.f32 %v688_v5, %v1015_v39  ;;  %v210_v8 = vpop.f32.mrb[9].mxu0  ;;  %v274_v12 = vsel %vm246_vm9, %v206_v63, %v260_v3  ;;  %v444_v3 = vmul.f32 5.0, %v443_v58 }
  0xfb   :  { %v211_v9 = vadd.f32 %v1015_v39, %v210_v8  ;;  %v273_v10 = vsel %vm245_vm8, %v201_v1, %v259_v6 }
  0xfc   :  { %v262_v11 = vmul.f32 0.01, %v216_v7  ;;  %736 = vmatprep.mubr.f32.mxu1 %v273_v10  ;;  %vm248_vm11 = vcmp.gt.f32.partialorder %v216_v7, 0.0 }
  0xfd   :  { %v261_v13 = vmul.f32 0.01, %v211_v9  ;;  %v691_v14 = vpop.f32.mrb[10].mxu0  ;;  %737 = vmatmul.mubr.f32.vlgmr.msra.gmra.mrb[0].mxu1 %v274_v12  ;;  %vm247_vm10 = vcmp.gt.f32.partialorder %v211_v9, 0.0 }
  0xfe   :  { %v226_v15 = vadd.f32 %v691_v14, %v1015_v39  ;;  %v220_v16 = vpop.f32.mrb[11].mxu0  ;;  %v276_v20 = vsel %vm248_vm11, %v216_v7, %v262_v11 }
  0xff   :  { %v221_v17 = vadd.f32 %v1015_v39, %v220_v16  ;;  %v275_v18 = vsel %vm247_vm10, %v211_v9, %v261_v13  ;;  %v445_v16 = vsub.f32 %v1043_v40, %v444_v3 }
 0x100   :  { %v264_v19 = vmul.f32 0.01, %v226_v15  ;;  %739 = vmatprep.mubr.f32.mxu1 %v275_v18  ;;  %vm250_vm13 = vcmp.gt.f32.partialorder %v226_v15, 0.0 }
 0x101   :  { %v263_v21 = vmul.f32 0.01, %v221_v17  ;;  %v694_v22 = vpop.f32.mrb[12].mxu0  ;;  %740 = vmatmul.mubr.f32.gmra.mrb[2].mxu1 %v276_v20  ;;  %vm249_vm12 = vcmp.gt.f32.partialorder %v221_v17, 0.0  ;;  %vm449_vm1 = vcmp.gt.f32.partialorder %v445_v16, 0.5  ;;  %vm451_vm3 = vcmp.lt.f32.partialorder %v445_v16, 2.5 }
 0x102   :  { %v236_v23 = vadd.f32 %v694_v22, %v1015_v39  ;;  %v230_v24 = vpop.f32.mrb[13].mxu0  ;;  %v278_v28 = vsel %vm250_vm13, %v226_v15, %v264_v19  ;;  %vm450_vm2 = vmand %vm446_vm0, %vm449_vm1  ;;  %vm447_vm4 = vcmp.lt.f32.partialorder %v445_v16, 0.5 }
 0x103   :  { %v231_v25 = vadd.f32 %v1015_v39, %v230_v24  ;;  %v277_v26 = vsel %vm249_vm12, %v221_v17, %v263_v21  ;;  %vm1099_vm5 = vmand %vm450_vm2, %vm451_vm3 }
 0x104   :  { %v266_v27 = vmul.f32 0.01, %v236_v23  ;;  %742 = vmatprep.mubr.f32.mxu1 %v277_v26  ;;  %vm252_vm15 = vcmp.gt.f32.partialorder %v236_v23, 0.0  ;;  %vm1105_vm6 = vmand %vm446_vm0, %vm447_vm4 }
 0x105   :  { %v265_v29 = vmul.f32 0.01, %v231_v25  ;;  %743 = vmatmul.mubr.f32.gmra.mrb[4].mxu1 %v278_v28  ;;  %vm251_vm14 = vcmp.gt.f32.partialorder %v231_v25, 0.0 }
 0x106   :  { %v280_v31 = vsel %vm252_vm15, %v236_v23, %v266_v27 }
 0x107   :  { %v279_v30 = vsel %vm251_vm14, %v231_v25, %v265_v29 }
 0x108   :  { %745 = vmatprep.mubr.f32.mxu1 %v279_v30 }
 0x109   :  { %746 = vmatmul.mubr.f32.gmra.mrb[6].mxu1 %v280_v31 }
 0x1c4   :  { %v729_v34 = vpop.f32.mrb[14].mxu0 }
 0x1c5   :  { %v1037_v36 = vadd.f32 %v729_v34, %v1034_v33  ;;  %v370_v37 = vpop.f32.mrb[15].mxu0 }
 0x1c6   :  { %v1040_v38 = vadd.f32 %v1034_v33, %v370_v37 }
 0x1c7   :  { %v454_v39 = vsub.f32 0.0, %v1037_v36 }
 0x1c8   :  { %v453_v41 = vsub.f32 0.0, %v1040_v38  ;;  %v732_v42 = vpop.f32.mrb[16].mxu0 }
 0x1c9   :  { %v469_v43 = vmul.f32 1.442695, %v454_v39  ;;  %v1047_v44 = vadd.f32 %v732_v42, %v1034_v33  ;;  %v380_v45 = vpop.f32.mrb[17].mxu0 }
 0x1ca   :  { %v467_v46 = vmul.f32 1.442695, %v453_v41  ;;  %v1050_v47 = vadd.f32 %v1034_v33, %v380_v45 }
 0x1cb   :  { %800 = vpow2.f32 %v469_v43  ;;  %v456_v48 = vsub.f32 0.0, %v1047_v44 }
 0x1cc   :  { %802 = vpow2.f32 %v467_v46  ;;  %v455_v50 = vsub.f32 0.0, %v1050_v47  ;;  %v735_v51 = vpop.f32.mrb[18].mxu0 }
 0x1cd   :  { %v473_v52 = vmul.f32 1.442695, %v456_v48  ;;  %v1056_v53 = vadd.f32 %v735_v51, %v1034_v33  ;;  %v390_v54 = vpop.f32.mrb[19].mxu0 }
 0x1ce   :  { %v471_v55 = vmul.f32 1.442695, %v455_v50  ;;  %v1059_v56 = vadd.f32 %v1034_v33, %v390_v54 }
 0x1cf   :  { %804 = vpow2.f32 %v473_v52  ;;  %v458_v57 = vsub.f32 0.0, %v1056_v53 }
 0x1d0   :  { %806 = vpow2.f32 %v471_v55  ;;  %v457_v59 = vsub.f32 0.0, %v1059_v56  ;;  %v738_v60 = vpop.f32.mrb[0].mxu1 }
 0x1d1   :  { %v477_v61 = vmul.f32 1.442695, %v458_v57  ;;  %v1064_v62 = vadd.f32 %v738_v60, %v1034_v33  ;;  %v400_v63 = vpop.f32.mrb[1].mxu1 }
 0x1d2   :  { %v475_v0 = vmul.f32 1.442695, %v457_v59  ;;  %v1067_v1 = vadd.f32 %v1034_v33, %v400_v63 }
 0x1d3   :  { %808 = vpow2.f32 %v477_v61  ;;  %v460_v2 = vsub.f32 0.0, %v1064_v62 }
 0x1d4   :  { %810 = vpow2.f32 %v475_v0  ;;  %v459_v4 = vsub.f32 0.0, %v1067_v1  ;;  %v741_v5 = vpop.f32.mrb[2].mxu1 }
 0x1d5   :  { %v801_v6 = vpop.eup %800  ;;  %v481_v7 = vmul.f32 1.442695, %v460_v2  ;;  %v1072_v8 = vadd.f32 %v741_v5, %v1034_v33  ;;  %v410_v9 = vpop.f32.mrb[3].mxu1 }
 0x1d6   :  { %v803_v10 = vpop.eup %802  ;;  %v496_v11 = vadd.f32 1.0, %v801_v6  ;;  %v479_v12 = vmul.f32 1.442695, %v459_v4  ;;  %v1075_v13 = vadd.f32 %v1034_v33, %v410_v9 }
 0x1d7   :  { %v495_v14 = vadd.f32 1.0, %v803_v10  ;;  %812 = vpow2.f32 %v481_v7  ;;  %v462_v15 = vsub.f32 0.0, %v1072_v8 }
 0x1d8   :  { %814 = vrcp.f32 %v496_v11  ;;  %v461_v17 = vsub.f32 0.0, %v1075_v13  ;;  %v744_v18 = vpop.f32.mrb[4].mxu1 }
 0x1d9   :  { %v805_v19 = vpop.eup %804  ;;  %816 = vrcp.f32 %v495_v14  ;;  %v485_v20 = vmul.f32 1.442695, %v462_v15  ;;  %v1081_v21 = vadd.f32 %v744_v18, %v1034_v33  ;;  %v420_v22 = vpop.f32.mrb[5].mxu1 }
 0x1da   :  { %v807_v23 = vpop.eup %806  ;;  %v498_v24 = vadd.f32 1.0, %v805_v19  ;;  %818 = vpow2.f32 %v479_v12  ;;  %v483_v25 = vmul.f32 1.442695, %v461_v17  ;;  %v1084_v26 = vadd.f32 %v1034_v33, %v420_v22 }
 0x1db   :  { %v497_v27 = vadd.f32 1.0, %v807_v23  ;;  %820 = vpow2.f32 %v485_v20  ;;  %v464_v28 = vsub.f32 0.0, %v1081_v21 }
 0x1dc   :  { %822 = vrcp.f32 %v498_v24  ;;  %v463_v29 = vsub.f32 0.0, %v1084_v26  ;;  %v747_v30 = vpop.f32.mrb[6].mxu1 }
 0x1dd   :  { %v809_v31 = vpop.eup %808  ;;  %824 = vrcp.f32 %v497_v27  ;;  %v489_v32 = vmul.f32 1.442695, %v464_v28  ;;  %v1090_v34 = vadd.f32 %v747_v30, %v1034_v33  ;;  %v430_v35 = vpop.f32.mrb[7].mxu1 }
 0x1de   :  { %v811_v37 = vpop.eup %810  ;;  %v500_v39 = vadd.f32 1.0, %v809_v31  ;;  %826 = vpow2.f32 %v483_v25  ;;  %v487_v41 = vmul.f32 1.442695, %v463_v29  ;;  %v1093_v42 = vadd.f32 %v1034_v33, %v430_v35 }
 0x1df   :  { %v499_v43 = vadd.f32 1.0, %v811_v37  ;;  %828 = vpow2.f32 %v489_v32  ;;  %v466_v45 = vsub.f32 0.0, %v1090_v34 }
 0x1e0   :  { %830 = vrcp.f32 %v500_v39  ;;  %v465_v46 = vsub.f32 0.0, %v1093_v42 }
 0x1e1   :  { %v813_v48 = vpop.eup %812  ;;  %832 = vrcp.f32 %v499_v43  ;;  %v493_v49 = vmul.f32 1.442695, %v466_v45 }
 0x1e2   :  { %v815_v50 = vpop.eup %814  ;;  %v502_v33 = vadd.f32 1.0, %v813_v48  ;;  %834 = vpow2.f32 %v487_v41  ;;  %v491_v52 = vmul.f32 1.442695, %v465_v46 }
 0x1e3   :  { %v817_v54 = vpop.eup %816  ;;  %v614_v57 = vadd.f32 -0.5, %v815_v50  ;;  %836 = vpow2.f32 %v493_v49 }
 0x1e4   :  { %v819_v58 = vpop.eup %818  ;;  %v613_v59 = vadd.f32 -0.5, %v817_v54  ;;  %838 = vrcp.f32 %v502_v33 }
 0x1e5   :  { %v821_v60 = vpop.eup %820  ;;  %v538_v61 = vsel %vm1099_vm5, %v614_v57, %v1037_v36  ;;  %v501_v63 = vadd.f32 1.0, %v819_v58  ;;  %840 = vpow2.f32 %v491_v52 }
 0x1e6   :  { %v823_v0 = vpop.eup %822  ;;  %v552_v40 = vsel %vm1105_vm6, %v815_v50, %v538_v61  ;;  %v537_v2 = vsel %vm1099_vm5, %v613_v59, %v1040_v38  ;;  %v504_v3 = vadd.f32 1.0, %v821_v60 }
 0x1e7   :  { %v825_v4 = vpop.eup %824  ;;  %566 = vst [vmem:[#allocation5 + $0x8] sm:$0xff] %v552_v40  ;;  %v551_v5 = vsel %vm1105_vm6, %v817_v54, %v537_v2  ;;  %v616_v6 = vadd.f32 -0.5, %v823_v0  ;;  %842 = vrcp.f32 %v501_v63 }
 0x1e8   :  { %v827_v7 = vpop.eup %826  ;;  %565 = vst [vmem:[#allocation5] sm:$0xff] %v551_v5  ;;  %v615_v36 = vadd.f32 -0.5, %v825_v4  ;;  %844 = vrcp.f32 %v504_v3 }
 0x1e9   :  { %v829_v9 = vpop.eup %828  ;;  %v540_v10 = vsel %vm1099_vm5, %v616_v6, %v1047_v44  ;;  %v503_v11 = vadd.f32 1.0, %v827_v7 }
 0x1ea   :  { %v831_v12 = vpop.eup %830  ;;  %v554_v38 = vsel %vm1105_vm6, %v823_v0, %v540_v10  ;;  %v539_v14 = vsel %vm1099_vm5, %v615_v36, %v1050_v47  ;;  %v506_v15 = vadd.f32 1.0, %v829_v9 }
 0x1eb   :  { %v833_v16 = vpop.eup %832  ;;  %568 = vst [vmem:[#allocation5 + $0x18] sm:$0xff] %v554_v38  ;;  %v553_v17 = vsel %vm1105_vm6, %v825_v4, %v539_v14  ;;  %v618_v18 = vadd.f32 -0.5, %v831_v12  ;;  %846 = vrcp.f32 %v503_v11 }
 0x1ec   :  { %v835_v19 = vpop.eup %834  ;;  %567 = vst [vmem:[#allocation5 + $0x10] sm:$0xff] %v553_v17  ;;  %v617_v44 = vadd.f32 -0.5, %v833_v16  ;;  %848 = vrcp.f32 %v506_v15 }
 0x1ed   :  { %v837_v20 = vpop.eup %836  ;;  %v542_v22 = vsel %vm1099_vm5, %v618_v18, %v1056_v53  ;;  %v505_v23 = vadd.f32 1.0, %v835_v19 }
 0x1ee   :  { %v839_v24 = vpop.eup %838  ;;  %v556_v47 = vsel %vm1105_vm6, %v831_v12, %v542_v22  ;;  %v541_v25 = vsel %vm1099_vm5, %v617_v44, %v1059_v56  ;;  %v508_v27 = vadd.f32 1.0, %v837_v20 }
 0x1ef   :  { %v841_v28 = vpop.eup %840  ;;  %570 = vst [vmem:[#allocation5 + $0x28] sm:$0xff] %v556_v47  ;;  %v555_v29 = vsel %vm1105_vm6, %v833_v16, %v541_v25  ;;  %v620_v30 = vadd.f32 -0.5, %v839_v24  ;;  %850 = vrcp.f32 %v505_v23 }
 0x1f0   :  { %569 = vst [vmem:[#allocation5 + $0x20] sm:$0xff] %v555_v29  ;;  %852 = vrcp.f32 %v508_v27  ;;  %v507_v53 = vadd.f32 1.0, %v841_v28 }
 0x1f1   :  { %v843_v31 = vpop.eup %842  ;;  %v544_v32 = vsel %vm1099_vm5, %v620_v30, %v1064_v62 }
 0x1f2   :  { %v845_v35 = vpop.eup %844  ;;  %v558_v56 = vsel %vm1105_vm6, %v839_v24, %v544_v32  ;;  %v619_v37 = vadd.f32 -0.5, %v843_v31  ;;  %854 = vrcp.f32 %v507_v53 }
 0x1f3   :  { %572 = vst [vmem:[#allocation5 + $0x38] sm:$0xff] %v558_v56  ;;  %v622_v39 = vadd.f32 -0.5, %v845_v35 }
 0x1f4   :  { %v543_v41 = vsel %vm1099_vm5, %v619_v37, %v1067_v1 }
 0x1f5   :  { %v847_v43 = vpop.eup %846  ;;  %v557_v45 = vsel %vm1105_vm6, %v843_v31, %v543_v41  ;;  %v546_v62 = vsel %vm1099_vm5, %v622_v39, %v1072_v8 }
 0x1f6   :  { %v849_v46 = vpop.eup %848  ;;  %571 = vst [vmem:[#allocation5 + $0x30] sm:$0xff] %v557_v45  ;;  %v560_v48 = vsel %vm1105_vm6, %v845_v35, %v546_v62  ;;  %v621_v49 = vadd.f32 -0.5, %v847_v43 }
 0x1f7   :  { %574 = vst [vmem:[#allocation5 + $0x48] sm:$0xff] %v560_v48  ;;  %v624_v50 = vadd.f32 -0.5, %v849_v46 }
 0x1f8   :  { %v545_v1 = vsel %vm1099_vm5, %v621_v49, %v1075_v13 }
 0x1f9   :  { %v851_v33 = vpop.eup %850  ;;  %v559_v52 = vsel %vm1105_vm6, %v847_v43, %v545_v1  ;;  %v548_v8 = vsel %vm1099_vm5, %v624_v50, %v1081_v21 }
 0x1fa   :  { %v853_v54 = vpop.eup %852  ;;  %573 = vst [vmem:[#allocation5 + $0x40] sm:$0xff] %v559_v52  ;;  %v562_v57 = vsel %vm1105_vm6, %v849_v46, %v548_v8  ;;  %v623_v58 = vadd.f32 -0.5, %v851_v33 }
 0x1fb   :  { %576 = vst [vmem:[#allocation5 + $0x58] sm:$0xff] %v562_v57  ;;  %v626_v59 = vadd.f32 -0.5, %v853_v54 }
 0x1fc   :  { %v855_v60 = vpop.eup %854  ;;  %v547_v13 = vsel %vm1099_vm5, %v623_v58, %v1084_v26 }
 0x1fd   :  { %v561_v61 = vsel %vm1105_vm6, %v851_v33, %v547_v13  ;;  %v550_v21 = vsel %vm1099_vm5, %v626_v59, %v1090_v34  ;;  %v625_v63 = vadd.f32 -0.5, %v855_v60 }
 0x1fe   :  { %575 = vst [vmem:[#allocation5 + $0x50] sm:$0xff] %v561_v61  ;;  %v564_v0 = vsel %vm1105_vm6, %v853_v54, %v550_v21 }
 0x1ff   :  { %578 = vst [vmem:[#allocation5 + $0x68] sm:$0xff] %v564_v0  ;;  %v549_v40 = vsel %vm1099_vm5, %v625_v63, %v1093_v42 }
 0x200   :  { %v563_v26 = vsel %vm1105_vm6, %v855_v60, %v549_v40 }
 0x201   :  { %577 = vst [vmem:[#allocation5 + $0x60] sm:$0xff] %v563_v26 }
 0x202   :  { %889 = shalt.err (!%p886_p12)
}
 0x203   :  { %s890_s16 = scalar_lea.hbm %s1199_s5, 1792 }
 0x204   :  { %p891_p13 = scmp.ne.s32.totalorder %s1199_s5, %s890_s16  ;;  %p894_p0 = scmp.lt.u32.totalorder %s890_s16, %s1199_s5 }
 0x206   :  { %p896_p1 = pnand %p894_p0, %p891_p13 }
 0x208   :  { %899 = shalt.err (!%p896_p1)
}
 0x209   :  { %590 = dma.vmem_to_hbm [thread:$0]  %s585_s13, 1792, %s1199_s5, [#allocation4], %s905_s28, %s905_s28, %s906_s29  }
 0x20a   :  { %902 = dma.done.wait [#allocation4], 1792  }
 0x20b   :  { %903 = vsyncadd [#allocation4], 4294965504 }
 0x20c   :  { %594 = vsyncpa [#allocation3], 1 }
 0x20d   :  { %595 = vsyncpa [#allocation4], 1 }

</bundles_post_ra>
